<compile_context>
chip_gen: v7x
topology: tpu7x:2x2x1
jax: 0.10.0
libtpu: 0.0.40
codegen_flags: <defaults>
</compile_context>

<pallas_src>
import functools

import jax
import jax.numpy as jnp
from jax.experimental import pallas as pl
from jax.experimental.pallas import tpu as pltpu


def _round_up(x: int, m: int) -> int:
    return ((x + m - 1) // m) * m


def _time_feature_embed_kernel(x_ref, w_ref, o_ref):
    # x_ref: (TM, d_inp) VMEM tile; w_ref: (d_inp, N) resident VMEM tile.
    # Single-shot MXU matmul, f32 accumulation, cast to output dtype.
    o_ref[...] = jnp.dot(
        x_ref[...], w_ref[...], preferred_element_type=jnp.float32
    ).astype(o_ref.dtype)


@functools.partial(jax.jit, static_argnames=("tm_max", "out_dtype"))
def time_feature_embedding(x, weight, *, tm_max: int = 2048, out_dtype=None):
    """x: [B, L, d_inp], weight: [d_inp, model_dim] (pre-transposed PyTorch weight).

    Returns [B, L, model_dim] = x @ weight  (nn.Linear(d_inp, model_dim, bias=False)).
    Pass out_dtype=jnp.bfloat16 to halve writeback bytes if downstream consumes bf16.
    """
    B, L, d_inp = x.shape
    d_inp_w, model_dim = weight.shape
    assert d_inp == d_inp_w
    if out_dtype is None:
        out_dtype = x.dtype
    out_dtype = jnp.dtype(out_dtype)

    M = B * L
    x2d = x.reshape(M, d_inp)

    # --- Output lane width. Only pad to 128 when model_dim < 128 (masked-store
    # penalty dominates there and the post-kernel slice is cheap). For
    # model_dim >= 128 (real configs 256/512) keep N == model_dim: zero padded
    # write bytes and zero post-kernel copies; a non-multiple-of-128 tail just
    # uses one masked vreg group.
    if model_dim < 128:
        N = 128
        weight = jnp.pad(weight, ((0, 0), (0, N - model_dim)))
    else:
        N = model_dim

    # --- Tile M. TM is a multiple of 8 (sublane constraint). Cap at ~M/2 so the
    # grid has >= 2 tiles (lets v7x split across its 2 TensorCores); no M padding
    # needed — Pallas clips the ragged last block.
    TM = min(tm_max, _round_up(max(pl.cdiv(M, 2), 1), 8))
    grid_m = pl.cdiv(M, TM)

    cost = pl.CostEstimate(
        flops=2 * M * d_inp * N,
        transcendentals=0,
        bytes_accessed=(
            M * d_inp * x.dtype.itemsize          # x read
            + d_inp * N * weight.dtype.itemsize   # resident weight (once)
            + M * N * out_dtype.itemsize          # output writeback (dominant)
        ),
    )

    out2d = pl.pallas_call(
        _time_feature_embed_kernel,
        out_shape=jax.ShapeDtypeStruct((M, N), out_dtype),
        grid_spec=pltpu.PrefetchScalarGridSpec(
            num_scalar_prefetch=0,
            grid=(grid_m,),
            in_specs=[
                # x tile marches along M (double-buffered by the pipeline).
                # d_inp (6/7) < 128 is allowed because it equals the full dim.
                pl.BlockSpec((TM, d_inp), lambda i: (i, 0)),
                # Weight is resident across the whole grid (fetched once).
                pl.BlockSpec((d_inp, N), lambda i: (0, 0)),
            ],
            out_specs=pl.BlockSpec((TM, N), lambda i: (i, 0)),
        ),
        compiler_params=pltpu.CompilerParams(
            # Independent M tiles -> shard across v7x's 2 TensorCores; neutral on v5e/v6e.
            dimension_semantics=("parallel",),
        ),
        cost_estimate=cost,
    )(x2d, weight)

    if N != model_dim:
        # Only hit when model_dim < 128 (small output) — real configs skip this.
        out2d = out2d[:, :model_dim]
    return out2d.reshape(B, L, model_dim)


if __name__ == "__main__":
    # freq='h' -> d_inp = 6 time features: [year, month, weekday, day, hour, minute]
    B, L, d_inp, model_dim = 2, 8, 6, 32

    key = jax.random.PRNGKey(0)
    kx, kw = jax.random.split(key)

    x = jax.random.normal(kx, (B, L, d_inp), dtype=jnp.float32)
    # PyTorch stores the Linear weight as [model_dim, d_inp]; we keep its
    # transpose [d_inp, model_dim] so the forward pass is x @ weight.
    bound = 1.0 / (d_inp ** 0.5)
    weight = jax.random.uniform(
        kw, (d_inp, model_dim), minval=-bound, maxval=bound, dtype=jnp.float32
    )

    out = time_feature_embedding(x, weight)
    out = jax.block_until_ready(out)

    # Correctness check against plain JAX reference.
    ref = jnp.einsum("bld,dm->blm", x, weight)
    assert out.shape == (B, L, model_dim)
    assert jnp.allclose(out, ref, atol=1e-5, rtol=1e-5)

    # Also exercise a "real" config (model_dim multiple of 128 -> no pad/slice path)
    # with an M that does not divide the tile, to cover the ragged-last-block path.
    B2, L2, md2 = 3, 37, 256
    x2 = jax.random.normal(kx, (B2, L2, d_inp), dtype=jnp.float32)
    w2 = jax.random.uniform(
        kw, (d_inp, md2), minval=-bound, maxval=bound, dtype=jnp.float32
    )
    out2 = jax.block_until_ready(time_feature_embedding(x2, w2))
    ref2 = jnp.einsum("bld,dm->blm", x2, w2)
    assert out2.shape == (B2, L2, md2)
    assert jnp.allclose(out2, ref2, atol=1e-5, rtol=1e-5)

    print("KERNEL_OK")
</pallas_src>

<mosaic_0001>
module attributes {stable_mosaic.version = 11 : i64} {
  func.func @_time_feature_embed_kernel(%arg0: i32, %arg1: memref<8x6xf32, #tpu.memory_space<vmem>>, %arg2: memref<6x128xf32, #tpu.memory_space<vmem>>, %arg3: memref<8x128xf32, #tpu.memory_space<vmem>>) attributes {dimension_semantics = [#tpu.dimension_semantics<parallel>], iteration_bounds = array<i64: 2>, scalar_prefetch = 0 : i64, scratch_operands = 0 : i64, tpu.core_type = #tpu.core_type<tc>, window_params = [{transform_indices = @transform_0, window_bounds = array<i64: 8, 6>}, {pipeline_mode = #tpu.pipeline_mode<synchronous>, transform_indices = @transform_1, window_bounds = array<i64: 6, 128>}, {transform_indices = @transform_2, window_bounds = array<i64: 8, 128>}]} {
    %c0 = arith.constant 0 : index
    %c0_0 = arith.constant 0 : index
    %0 = vector.load %arg1[%c0, %c0_0] : memref<8x6xf32, #tpu.memory_space<vmem>>, vector<8x6xf32>
    %c0_1 = arith.constant 0 : index
    %c0_2 = arith.constant 0 : index
    %1 = vector.load %arg2[%c0_1, %c0_2] : memref<6x128xf32, #tpu.memory_space<vmem>>, vector<6x128xf32>
    %cst = arith.constant dense<0.000000e+00> : vector<8x128xf32>
    %2 = tpu.matmul %0, %1, %cst {dimension_numbers = #tpu.dot_dimension_numbers<[1], [0], [0], [1], [0, 0, 1, 1], [], []>} : vector<8x6xf32>, vector<6x128xf32>, vector<8x128xf32> -> vector<8x128xf32>
    %c0_3 = arith.constant 0 : index
    %c0_4 = arith.constant 0 : index
    %3 = vector.load %arg3[%c0_3, %c0_4] : memref<8x128xf32, #tpu.memory_space<vmem>>, vector<8x128xf32>
    tpu.vector_store %arg3[%c0_3, %c0_4], %2 {strides = array<i32>} : memref<8x128xf32, #tpu.memory_space<vmem>>, vector<8x128xf32>,
    return
  }
  func.func @transform_0(%arg0: i32) -> (i32, i32) {
    %c0_i32 = arith.constant 0 : i32
    %c0_i32_0 = arith.constant 0 : i32
    return %arg0, %c0_i32 : i32, i32
  }
  func.func @transform_1(%arg0: i32) -> (i32, i32) {
    %c0_i32 = arith.constant 0 : i32
    %c0_i32_0 = arith.constant 0 : i32
    %c0_i32_1 = arith.constant 0 : i32
    return %c0_i32, %c0_i32_0 : i32, i32
  }
  func.func @transform_2(%arg0: i32) -> (i32, i32) {
    %c0_i32 = arith.constant 0 : i32
    %c0_i32_0 = arith.constant 0 : i32
    return %arg0, %c0_i32 : i32, i32
  }
}

</mosaic_0001>

<bundles_post_ra>
// kernel: time_feature_embedding.1
= control target key start
LH: loop header
LB: loop body
LE: loop exit
PB: predicated region body
PF: predicated region fallthrough
CT: control target
= control target key end

     0   :  { %s326_s9 = smov 0   ;;  %s340_s0 = inlined_call_operand.vmem [shape: f32[16,6], index: 0, kind: input, shape index: {}]   ;;  %s341_s1 = inlined_call_operand.vmem [shape: f32[6,128], index: 1, kind: input, shape index: {}]   ;;  %s342_s2 = inlined_call_operand.vmem [shape: f32[16,128], index: 2, kind: output, shape index: {}]  }
   0x1 LB: > { %s273_s10 = sadd.s32 4294967295, %s307_s9   ;;  %p277_p0 = scmp.ge.s32.totalorder %s307_s9, 1  ;;  %s307_s9 = sphi %s326_s9, %s12_s9  }
   0x2   : > { %p111_p1 = scmp.lt.s32.totalorder %s307_s9, 3 }
   0x4   : > { %p112_p2 = pnand %p277_p0, %p111_p1 }
   0x5   : > { %v140_v0 = vld [vmem:[%s341_s1] sm:$0x3f] (!%p112_p2)  ;;  %vm145_vm0 = vcmask (!%p112_p2), 1045504   ;;  %p131_p3 = scmp.lt.s32.totalorder (!%p112_p2), %s273_s10, 1  ;;  %v309_v1 = vmov (!%p112_p2), 0.0   ;;  %vm310_vm1 = vmmov (!%p112_p2), 0  }
   0x6   : > { %115 = sbr.rel (%p112_p2) target bundleno = 230 (0xe6), region = 28  ;;  %286 = vmatprep.subr.mxu0 (!%p112_p2), %v309_v1  ;;  %288 = vmatprep.mubr.msk.f32.mxu0 (!%p112_p2), %vm310_vm1, %v309_v1  ;;  %vm141_vm2 = vcmask (!%p112_p2), 48128  }
   0x7   : > { %287 = vmatpush3.msk.msra.mxu0 (!%p112_p2), %vm145_vm0, %v140_v0 }
   0xd   : > { %s344_s10 = smov (!%p131_p3, %s273_s10), 1 }
   0xe   : > { %s278_s13 = sshll.u32 %s344_s10, 3 }
   0xf   : > { %s134_s16 = scalar_lea.vmem %s340_s0, %s278_s13  ;;  %s138_s19 = scalar_lea.vmem %s342_s2, %s278_s13 }
  0x10   : > { %v139_v2 = vld [vmem:[%s134_s16] sm:$0xff] }
  0x11   : > { %289 = vmatmul.mubr.msk.f32.vlgmr.msra.gmra.mrb[0].mxu0 %vm141_vm2, %v139_v2 }
  0xe4   : > { %v215_v3 = vpop.f32.mrb[0].mxu0 }
  0xe5   : > { %219 = vst [vmem:[%s138_s19] sm:$0xff] %v215_v3  ;;  %v290_v4 = vpop.f32.mrb[1].mxu0 }
  0xe6 PF: > { %s12_s9 = sadd.s32 1, %s307_s9  }
  0xe7   : > { %p9_p4 = scmp.ge.s32.totalorder %s12_s9, 4  }
  0xe9   :  { %11 = sbr.rel (!%p9_p4) target bundleno = 1 (0x1), region = 58 }

</bundles_post_ra>
